<compile_context>
chip_gen: v7x
topology: tpu7x:2x2x1
jax: 0.10.0
libtpu: 0.0.40
codegen_flags: <defaults>
</compile_context>

<pallas_src>
import functools

import jax
import jax.numpy as jnp
from jax.experimental import pallas as pl
from jax.experimental.pallas import tpu as pltpu


# ---------------------------------------------------------------------------
# Pallas kernel: k-harmonic resistance for G graphs per grid step
# ---------------------------------------------------------------------------
def _kharmonic_kernel(k_ref, eigval_ref, eigvec_ref, res_ref, *, group, n,
                      matmul_dtype, lane_packed):
    # k_ref: SMEM (1,) f32 (scaled_k = 5*k); eigval block (G,1,N);
    # eigvec block (G,N,N); output block (G,N,N) (lane-dense N) or
    # (1,N,G*N) (graphs packed along lanes).
    k = k_ref[0]

    # Hoisted eigenvalue processing for the whole group: clamp(min=0) and
    # lam**k with 0**k := 0 (valid for scaled_k > 0).
    lam = jnp.maximum(eigval_ref[...], 0.0)                       # (G,1,N)
    safe = jnp.where(lam > 0.0, lam, 1.0)
    lam_frac = jnp.where(lam > 0.0, jnp.exp(k * jnp.log(safe)), 0.0)

    ones_row = jnp.ones((1, n), jnp.float32)   # hoisted; no per-iter broadcast

    for g in range(group):                     # static unroll, G is capped
        v = eigvec_ref[g]                                         # (N,N) f32
        scaled = v * lam_frac[g]                                  # V diag(lam**k)

        # bf16 operands + f32 accumulation -> MXU native mode on v5e/v6e/v7x.
        v_mx = v.astype(matmul_dtype)
        s_mx = scaled.astype(matmul_dtype)

        # pinvsq = (V diag(lam**k)) @ V^T via the transposed-RHS MXU path.
        pinvsq = jax.lax.dot_general(
            s_mx, v_mx, (((1,), (1,)), ((), ())),
            preferred_element_type=jnp.float32)                   # (N,N) f32

        # Diagonal from the same rounded operands (so R_ii ~ 0), computed on
        # the VPU so it overlaps the matmul.  One cast pass: multiply in the
        # matmul dtype, accumulate in f32.
        prod = (s_mx * v_mx).astype(jnp.float32)                  # (N,N)
        d_col = jnp.sum(prod, axis=1, keepdims=True)              # (N,1): d_i
        # Lane-aligned copy of the diagonal via a tiny ones-row MXU matvec
        # (robust lowering; MXU has slack here).
        d_row = jax.lax.dot_general(
            ones_row, prod, (((1,), (1,)), ((), ())),
            preferred_element_type=jnp.float32)                   # (1,N): d_j

        block = (d_col + d_row - 2.0 * pinvsq).astype(res_ref.dtype)

        # Per-graph store into a static slice of the output ref: bounds the
        # live ranges (no end-of-loop concatenate) while the HBM writeback
        # DMA remains the full (lane-dense) output block.
        if lane_packed:
            res_ref[0, :, g * n:(g + 1) * n] = block
        else:
            res_ref[g] = block


# ---------------------------------------------------------------------------
# Chip-aware VMEM / group-size planning
# ---------------------------------------------------------------------------
def _vmem_plan():
    """Returns (vmem_limit_bytes, sizing_budget_bytes, min_grid_steps)."""
    try:
        cap = pltpu.get_tpu_info().vmem_capacity_bytes
    except Exception:
        cap = 64 * 1024 * 1024          # conservative fallback: v7x per-TC
    mib = 1024 * 1024
    if cap >= 100 * mib:                 # v5e / v6e: 128 MiB VMEM, single TC
        return 96 * mib, 80 * mib, 1     # no >=2-step constraint
    # v7x: 64 MiB per TC, two TCs -> headroom + keep both cores fed
    return 48 * mib, 40 * mib, 2


def _ceil_to(x, m):
    return -(-x // m) * m


def _choose_group_size(num_graphs, n, lane_packed, vmem_budget, min_steps,
                       unroll_cap=64):
    """Largest divisor of num_graphs that fits the (8,128)-padded VMEM budget.

    Amortizes the ~0.35us per-step pipeline overhead by moving as much data
    per grid step as the per-generation VMEM budget allows; `min_steps` keeps
    both v7x TensorCores busy (the grid axis is 'parallel'); `unroll_cap`
    bounds the static Python unroll / compile time.
    """
    n_rows = _ceil_to(n, 8)
    n_lanes = _ceil_to(n, 128)

    def vmem_bytes(g):
        vec_in = 2 * g * n_rows * n_lanes * 4            # eigvecs, double-buf
        val_in = 2 * g * 8 * n_lanes * 4                 # eigvals, padded rows
        if lane_packed:
            out = 2 * n_rows * _ceil_to(g * n, 128) * 4  # packed out, dbl-buf
        else:
            out = 2 * g * n_rows * n_lanes * 4
        temps = 8 * n_rows * n_lanes * 4                 # live temps (1 graph)
        return vec_in + val_in + out + temps

    cap = max(1, min(num_graphs, unroll_cap))
    best = 1
    for g in range(1, cap + 1):
        if num_graphs % g != 0:
            continue
        if vmem_bytes(g) > vmem_budget:
            continue
        steps = num_graphs // g
        if num_graphs >= min_steps and steps < min_steps:
            continue
        best = g
    return best


# ---------------------------------------------------------------------------
# Wrapper
# ---------------------------------------------------------------------------
def kharmonic_resistance(scaled_k, eigvals, eigvecs, *, group_size=None,
                         matmul_dtype=jnp.bfloat16, out_dtype=jnp.float32):
    """eigvals: (B,N) f32, eigvecs: (B,N,N) f32.

    Returns (result, pack):
      pack == 1: result is (B, N, N)          (N lane-dense, stored directly)
      pack == G: result is (B//G, N, G*N)     (lane-packed; no unpack done)
    Use gather_resistance / unpack_resistance to consume.
    """
    B, N, _ = eigvecs.shape
    lane_packed = (N % 128 != 0)
    vmem_limit, vmem_budget, min_steps = _vmem_plan()
    G = group_size if group_size is not None else _choose_group_size(
        B, N, lane_packed, vmem_budget, min_steps)
    assert B % G == 0, f"group_size {G} must divide batch {B}"
    num_groups = B // G

    eigvals_r = eigvals.reshape(B, 1, N).astype(jnp.float32)
    eigvecs_r = eigvecs.astype(jnp.float32)
    k_arr = jnp.asarray(scaled_k, jnp.float32).reshape(1)

    kernel = functools.partial(_kharmonic_kernel, group=G, n=N,
                               matmul_dtype=matmul_dtype,
                               lane_packed=lane_packed)

    if lane_packed:
        out_shape = jax.ShapeDtypeStruct((num_groups, N, G * N), out_dtype)
        out_spec = pl.BlockSpec((1, N, G * N), lambda b: (b, 0, 0))
        pack = G
    else:
        out_shape = jax.ShapeDtypeStruct((B, N, N), out_dtype)
        out_spec = pl.BlockSpec((G, N, N), lambda b: (b, 0, 0))
        pack = 1

    result = pl.pallas_call(
        kernel,
        out_shape=out_shape,
        grid=(num_groups,),
        in_specs=[
            pl.BlockSpec(memory_space=pltpu.SMEM),             # scaled_k scalar
            pl.BlockSpec((G, 1, N), lambda b: (b, 0, 0)),      # eigvals
            pl.BlockSpec((G, N, N), lambda b: (b, 0, 0)),      # eigvecs
        ],
        out_specs=out_spec,
        compiler_params=pltpu.CompilerParams(
            dimension_semantics=("parallel",),     # megacore-shard groups
            vmem_limit_bytes=vmem_limit),
    )(k_arr, eigvals_r, eigvecs_r)
    return result, pack


def gather_resistance(result, pack, n, bidx):
    """Per-edge gather directly on the kernel's output layout (no unpack)."""
    b, i, j = bidx[0], bidx[1], bidx[2]
    if pack == 1:
        return result[b, i, j]
    return result[b // pack, i, (b % pack) * n + j]


def unpack_resistance(result, pack, num_graphs, n):
    """Materialize the full (B, N, N) resistance matrix (tests / debugging)."""
    if pack == 1:
        return result
    ng = result.shape[0]
    r = result.reshape(ng, n, pack, n)
    return jnp.transpose(r, (0, 2, 1, 3)).reshape(num_graphs, n, n)


# ---------------------------------------------------------------------------
# Plain-JAX glue (graph bookkeeping, Laplacian, eigh, per-edge gather)
# ---------------------------------------------------------------------------
def get_batched_edge_indices(edge_index, batch, num_graphs):
    edge_batch = batch[edge_index[0]]
    counts = jnp.bincount(batch, length=num_graphs)
    cum = jnp.cumsum(counts)
    cum = jnp.concatenate([jnp.zeros((1,), cum.dtype), cum[:-1]])
    rel = edge_index - cum[edge_batch][None, :]
    return jnp.concatenate([edge_batch[None, :], rel], axis=0)


def build_dense_laplacian(edge_index, batch, num_graphs, max_nodes):
    """Equivalent of get_laplacian + to_dense_adj (unnormalized L = D - A)."""
    bidx = get_batched_edge_indices(edge_index, batch, num_graphs)
    A = jnp.zeros((num_graphs, max_nodes, max_nodes), jnp.float32)
    A = A.at[bidx[0], bidx[1], bidx[2]].add(1.0)
    deg = A.sum(axis=2)
    L = jax.vmap(jnp.diag)(deg) - A
    return L, bidx


def learnable_kharmonic_forward(edge_index, batch, k_param, num_graphs,
                                max_nodes, *, matmul_dtype=jnp.bfloat16):
    scaled_k = k_param * 5.0
    L, bidx = build_dense_laplacian(edge_index, batch, num_graphs, max_nodes)
    # TODO(synk): eigh has no Pallas equivalent; done in plain JAX.
    # pinv(L) shares eigenvectors with L and its eigenvalues are 1/lambda for
    # lambda > tol (0 otherwise), so a single eigh(L) replaces pinv()+eigh().
    lam_L, eigvec = jnp.linalg.eigh(L)
    tol = (max_nodes * jnp.finfo(jnp.float32).eps
           * jnp.max(jnp.abs(lam_L), axis=1, keepdims=True))
    nonzero = lam_L > tol
    eigval = jnp.where(nonzero, 1.0 / jnp.where(nonzero, lam_L, 1.0), 0.0)

    result, pack = kharmonic_resistance(scaled_k, eigval, eigvec,
                                        matmul_dtype=matmul_dtype)
    # Per-edge gather of effective resistances straight off the kernel layout.
    eff_res = gather_resistance(result, pack, max_nodes, bidx)
    return eff_res[:, None], (result, pack), (eigval, eigvec, scaled_k)


# ---------------------------------------------------------------------------
if __name__ == "__main__":
    key = jax.random.PRNGKey(0)
    B, N = 2, 16                     # 2 graphs, 16 nodes each

    # deterministic undirected graphs: a ring per graph plus one random chord
    nodes = jnp.arange(N, dtype=jnp.int32)
    ring_src = jnp.concatenate([nodes, (nodes + 1) % N])
    ring_dst = jnp.concatenate([(nodes + 1) % N, nodes])

    ka, kb = jax.random.split(key)
    chord_a = jax.random.randint(ka, (B,), 0, N, dtype=jnp.int32)
    chord_off = jax.random.randint(kb, (B,), 2, N - 1, dtype=jnp.int32)
    chord_b = (chord_a + chord_off) % N

    edge_cols = []
    for g in range(B):
        off = g * N
        src = jnp.concatenate([ring_src + off,
                               chord_a[g:g + 1] + off, chord_b[g:g + 1] + off])
        dst = jnp.concatenate([ring_dst + off,
                               chord_b[g:g + 1] + off, chord_a[g:g + 1] + off])
        edge_cols.append(jnp.stack([src, dst]))
    edge_index = jnp.concatenate(edge_cols, axis=1).astype(jnp.int32)   # (2, E)
    batch = jnp.repeat(jnp.arange(B, dtype=jnp.int32), N)               # (B*N,)

    # deterministic parameter init (module __init__: k = 0.3)
    k_param = jnp.float32(0.3)

    # --- f32-MXU path: tight check against the pure-JAX reference ----------
    eff32, (res32_p, pack32), (eigval, eigvec, scaled_k) = \
        learnable_kharmonic_forward(edge_index, batch, k_param, B, N,
                                    matmul_dtype=jnp.float32)
    jax.block_until_ready(eff32)
    res32 = unpack_resistance(res32_p, pack32, B, N)

    lam_ref = jnp.power(jnp.clip(eigval, 0.0), scaled_k)
    pinvsq_ref = jnp.einsum("bij,bj,bkj->bik", eigvec, lam_ref, eigvec)
    diag_ref = jnp.diagonal(pinvsq_ref, axis1=1, axis2=2)
    res_ref = diag_ref[:, :, None] + diag_ref[:, None, :] - 2.0 * pinvsq_ref
    assert jnp.allclose(res32, res_ref, atol=1e-3), "f32 path mismatch vs reference"

    bidx = get_batched_edge_indices(edge_index, batch, B)
    eff_ref = res_ref[bidx[0], bidx[1], bidx[2]]
    assert jnp.allclose(eff32[:, 0], eff_ref, atol=1e-3), "f32 gather mismatch"

    # --- default path (bf16 MXU operands, f32 accumulation): looser check ---
    eff_res, (res_p, pack), _ = learnable_kharmonic_forward(
        edge_index, batch, k_param, B, N)
    jax.block_until_ready(eff_res)
    assert eff_res.shape == (edge_index.shape[1], 1)
    resistance = unpack_resistance(res_p, pack, B, N)
    err = jnp.max(jnp.abs(resistance - res_ref))
    scale = jnp.maximum(jnp.max(jnp.abs(res_ref)), 1.0)
    assert float(err / scale) < 5e-2, f"bf16 path error too large: {float(err)}"

    print("KERNEL_OK")
</pallas_src>

<mosaic_0001>
module attributes {stable_mosaic.version = 11 : i64} {
  func.func @_kharmonic_kernel(%arg0: i32, %arg1: memref<1xf32, #tpu.memory_space<smem>>, %arg2: memref<1x1x16xf32, #tpu.memory_space<vmem>>, %arg3: memref<1x16x16xf32, #tpu.memory_space<vmem>>, %arg4: memref<1x16x16xf32, #tpu.memory_space<vmem>>) attributes {dimension_semantics = [#tpu.dimension_semantics<parallel>], iteration_bounds = array<i64: 2>, scalar_prefetch = 0 : i64, scratch_operands = 0 : i64, tpu.core_type = #tpu.core_type<tc>, window_params = [{transform_indices = @transform_0, window_bounds = array<i64: 1>}, {transform_indices = @transform_1, window_bounds = array<i64: 1, 1, 16>}, {transform_indices = @transform_2, window_bounds = array<i64: 1, 16, 16>}, {transform_indices = @transform_3, window_bounds = array<i64: 1, 16, 16>}]} {
    %c0 = arith.constant 0 : index
    %0 = memref.load %arg1[%c0] : memref<1xf32, #tpu.memory_space<smem>>
    %c0_0 = arith.constant 0 : index
    %c0_1 = arith.constant 0 : index
    %c0_2 = arith.constant 0 : index
    %1 = vector.load %arg2[%c0_0, %c0_1, %c0_2] : memref<1x1x16xf32, #tpu.memory_space<vmem>>, vector<1x1x16xf32>
    %cst = arith.constant 0.000000e+00 : f32
    %2 = vector.broadcast %cst : f32 to vector<1x1x16xf32>
    %3 = arith.maximumf %1, %2 : vector<1x1x16xf32>
    %cst_3 = arith.constant 0.000000e+00 : f32
    %4 = vector.broadcast %cst_3 : f32 to vector<1x1x16xf32>
    %5 = arith.cmpf ogt, %3, %4 : vector<1x1x16xf32>
    %cst_4 = arith.constant 1.000000e+00 : f32
    %6 = vector.broadcast %cst_4 : f32 to vector<1x1x16xf32>
    %7 = arith.select %5, %3, %6 : vector<1x1x16xi1>, vector<1x1x16xf32>
    %cst_5 = arith.constant 0.000000e+00 : f32
    %8 = vector.broadcast %cst_5 : f32 to vector<1x1x16xf32>
    %9 = arith.cmpf ogt, %3, %8 : vector<1x1x16xf32>
    %10 = math.log %7 : vector<1x1x16xf32>
    %11 = vector.broadcast %0 : f32 to vector<1x1x16xf32>
    %12 = arith.mulf %11, %10 : vector<1x1x16xf32>
    %13 = math.exp %12 : vector<1x1x16xf32>
    %cst_6 = arith.constant 0.000000e+00 : f32
    %14 = vector.broadcast %cst_6 : f32 to vector<1x1x16xf32>
    %15 = arith.select %9, %13, %14 : vector<1x1x16xi1>, vector<1x1x16xf32>
    %cst_7 = arith.constant 1.000000e+00 : f32
    %16 = vector.broadcast %cst_7 : f32 to vector<1x16xf32>
    %c0_8 = arith.constant 0 : index
    %c0_9 = arith.constant 0 : index
    %c0_10 = arith.constant 0 : index
    %17 = vector.load %arg3[%c0_8, %c0_9, %c0_10] : memref<1x16x16xf32, #tpu.memory_space<vmem>>, vector<1x16x16xf32>
    %18 = vector.shape_cast %17 : vector<1x16x16xf32> to vector<16x16xf32>
    %19 = vector.shape_cast %15 : vector<1x1x16xf32> to vector<1x16xf32>
    %20 = vector.broadcast %19 : vector<1x16xf32> to vector<16x16xf32>
    %21 = arith.mulf %18, %20 : vector<16x16xf32>
    %cst_11 = arith.constant dense<0.000000e+00> : vector<16x16xf32>
    %22 = tpu.matmul %21, %18, %cst_11 {dimension_numbers = #tpu.dot_dimension_numbers<[1], [1], [0], [0], [0, 0, 1, 0], [], []>} : vector<16x16xf32>, vector<16x16xf32>, vector<16x16xf32> -> vector<16x16xf32>
    %23 = arith.mulf %21, %18 : vector<16x16xf32>
    %cst_12 = arith.constant dense<0.000000e+00> : vector<16xf32>
    %24 = vector.multi_reduction <add>, %23, %cst_12 [1] : vector<16x16xf32> to vector<16xf32>
    %25 = vector.shape_cast %24 : vector<16xf32> to vector<16x1xf32>
    %cst_13 = arith.constant dense<0.000000e+00> : vector<1x16xf32>
    %26 = tpu.matmul %16, %23, %cst_13 {dimension_numbers = #tpu.dot_dimension_numbers<[1], [1], [0], [0], [0, 0, 1, 0], [], []>} : vector<1x16xf32>, vector<16x16xf32>, vector<1x16xf32> -> vector<1x16xf32>
    %27 = vector.broadcast %25 : vector<16x1xf32> to vector<16x16xf32>
    %28 = vector.broadcast %26 : vector<1x16xf32> to vector<16x16xf32>
    %29 = arith.addf %27, %28 : vector<16x16xf32>
    %cst_14 = arith.constant 2.000000e+00 : f32
    %30 = vector.broadcast %cst_14 : f32 to vector<16x16xf32>
    %31 = arith.mulf %30, %22 : vector<16x16xf32>
    %32 = arith.subf %29, %31 : vector<16x16xf32>
    %c0_15 = arith.constant 0 : index
    %c0_16 = arith.constant 0 : index
    %c0_17 = arith.constant 0 : index
    %33 = vector.load %arg4[%c0_15, %c0_16, %c0_17] : memref<1x16x16xf32, #tpu.memory_space<vmem>>, vector<1x16x16xf32>
    %34 = vector.shape_cast %33 : vector<1x16x16xf32> to vector<16x16xf32>
    %35 = vector.shape_cast %32 : vector<16x16xf32> to vector<1x16x16xf32>
    tpu.vector_store %arg4[%c0_15, %c0_16, %c0_17], %35 {strides = array<i32>} : memref<1x16x16xf32, #tpu.memory_space<vmem>>, vector<1x16x16xf32>,
    return
  }
  func.func @transform_0(%arg0: i32) -> i32 {
    %c0_i32 = arith.constant 0 : i32
    %c0_i32_0 = arith.constant 0 : i32
    return %c0_i32 : i32
  }
  func.func @transform_1(%arg0: i32) -> (i32, i32, i32) {
    %c0_i32 = arith.constant 0 : i32
    %c0_i32_0 = arith.constant 0 : i32
    %c0_i32_1 = arith.constant 0 : i32
    return %arg0, %c0_i32, %c0_i32_0 : i32, i32, i32
  }
  func.func @transform_2(%arg0: i32) -> (i32, i32, i32) {
    %c0_i32 = arith.constant 0 : i32
    %c0_i32_0 = arith.constant 0 : i32
    %c0_i32_1 = arith.constant 0 : i32
    return %arg0, %c0_i32, %c0_i32_0 : i32, i32, i32
  }
  func.func @transform_3(%arg0: i32) -> (i32, i32, i32) {
    %c0_i32 = arith.constant 0 : i32
    %c0_i32_0 = arith.constant 0 : i32
    %c0_i32_1 = arith.constant 0 : i32
    return %arg0, %c0_i32, %c0_i32_0 : i32, i32, i32
  }
}

</mosaic_0001>

<bundles_post_ra>
// kernel: tpu_custom_call.1
= control target key start
LH: loop header
LB: loop body
LE: loop exit
PB: predicated region body
PF: predicated region fallthrough
CT: control target
= control target key end

     0   :  { %s950_s0 = inlined_call_operand.<no memory space> [shape: f32[1], index: 0, kind: input, shape index: {}]   ;;  %s951_s1 = inlined_call_operand.vmem [shape: f32[2,1,16], index: 1, kind: input, shape index: {}]   ;;  %s952_s2 = inlined_call_operand.hbm [shape: f32[2,16,16], index: 2, kind: input, shape index: {}]   ;;  %s953_s3 = inlined_call_operand.hbm [shape: f32[2,16,16], index: 3, kind: output, shape index: {}]  }
   0x1   :  { %8 = sst [smem:[#allocation2]] %s950_s0 }
   0x2   :  { %9 = vsyncpa [#allocation4], 0 }
   0x3   :  { %11 = vsyncpa [#allocation4 + $0x1], 0 }
   0x4   :  { %12 = vsyncpa [#allocation5], 0 }
   0x5   :  { %14 = vsyncpa [#allocation5 + $0x1], 0  ;;  %s752_s14 = smov 0   ;;  %s754_s15 = smov 0  }
   0x6   :  { %s756_s16 = smov 0   ;;  %s758_s17 = smov 0  }
   0x7 LB: > { %s773_s0 = sadd.s32 4294967295, %s717_s17   ;;  %s509_s18 = sadd.s32 4294967294, %s717_s17   ;;  %s717_s17 = sphi %s758_s17, %s970_s17   ;;  %s713_s16 = sphi %s756_s16, %s969_s16   ;;  %s709_s15 = sphi %s754_s15, %s968_s15   ;;  %s705_s14 = sphi %s752_s14, %s967_s14  }
   0x8   : > { %s777_s19 = sadd.s32 1, %s717_s17   ;;  %s74_s20 = sadd.s32 1, %s713_s16 }
   0x9   : > { %s71_s21 = ssub.s32 %s717_s17, %s777_s19  ;;  %p81_p0 = scmp.ne.s32.totalorder %s713_s16, %s709_s15 }
   0xa   : > { %p72_p1 = scmp.eq.s32.totalorder %s71_s21, 0  ;;  %p82_p2 = scmp.eq.s32.totalorder %s717_s17, 0 }
   0xb   : > { %p87_p3 = scmp.ne.s32.totalorder %s709_s15, %s705_s14  ;;  %p88_p4 = scmp.eq.s32.totalorder %s773_s0, 0 }
   0xc   : > { %s789_s22 = scalar_select %p72_p1, %s713_s16, %s74_s20  }
   0xd   : > { %p791_p5 = por %p82_p2, %p81_p0  ;;  %p795_p6 = por %p88_p4, %p87_p3 }
   0xe   : > { %p111_p7 = scmp.eq.s32.totalorder %s773_s0, 1  ;;  %p117_p8 = scmp.eq.s32.totalorder %s509_s18, 1 }
   0xf   : > { %p575_p10 = scmp.lt.s32.totalorder %s717_s17, 2  ;;  %s146_s27 = sand.u32 1, %s713_s16  }
  0x10   : > { %p802_p11 = por %p111_p7, %p81_p0  ;;  %p806_p12 = por %p117_p8, %p87_p3 }
  0x11   : > { %s530_s28 = sshll.u32 %s717_s17, 8  ;;  %s512_s29 = sshll.u32 %s146_s27, 4 }
  0x12   : > { %s957_s25 = scalar_select %p802_p11, 1, 0 }
  0x13   : > { %s958_s26 = scalar_select %p806_p12, 1, 0 }
  0x14   : > { %s815_s5 = scalar_lea.hbm %s952_s2, %s530_s28  ;;  %s150_s6 = scalar_lea.vmem [#allocation3], %s512_s29 }
  0x15   : > { %s157_s7 = sshll.u32 %s150_s6, 4  ;;  %p819_p13 = pnand %p575_p10, %p791_p5  ;;  %s823_s7 = int_to_ptr.vmem [resolvable:$true] %s157_s7 }
  0x16   : > { %s825_s9 = scalar_lea.sflag [#allocation4], %s146_s27  ;;  %s621_s10 = scalar_lea.hbm %s815_s5, 256 }
  0x17   : > { %p622_p0 = scmp.ne.s32.totalorder %s815_s5, %s621_s10  ;;  %p623_p1 = pneg %p819_p13 }
  0x18   : > { %s626_s13 = scalar_lea.hbm %s952_s2, 512  ;;  %p627_p4 = scmp.lt.u32.totalorder %s815_s5, %s952_s2 }
  0x19   : > { %p624_p2 = pnand %p623_p1, %p622_p0  ;;  %p628_p5 = scmp.lt.u32.totalorder %s626_s13, %s621_s10 }
  0x1a   : > { %p630_p8 = scmp.lt.u32.totalorder %s621_s10, %s815_s5 }
  0x1b   : > { %p625_p3 = pneg %p624_p2  ;;  %p629_p7 = por %p628_p5, %p627_p4 }
  0x1d   : > { %p631_p10 = por %p630_p8, %p629_p7 }
  0x1f   : > { %p632_p9 = pnand %p631_p10, %p625_p3 }
  0x21   : > { %635 = shalt.err (!%p632_p9)
}
  0x22   : > { %s636_s21 = scalar_lea.vmem %s823_s7, 256  ;;  %s719_s23 = smov [#allocation3]  }
  0x23   : > { %p637_p0 = scmp.ne.s32.totalorder %s823_s7, %s636_s21  ;;  %s641_s27 = sshll.u32 %s719_s23, 4  ;;  %s642_s27 = int_to_ptr.vmem [resolvable:$false] %s641_s27 }
  0x24   : > { %s643_s28 = scalar_lea.vmem %s642_s27, 512  ;;  %p644_p11 = scmp.lt.s32.totalorder %s823_s7, %s642_s27 }
  0x25   : > { %p639_p2 = pnand %p637_p0, %p623_p1  ;;  %p645_p4 = scmp.lt.s32.totalorder %s643_s28, %s636_s21 }
  0x27   : > { %p640_p12 = pneg %p639_p2  ;;  %p646_p5 = por %p645_p4, %p644_p11 }
  0x29   : > { %p647_p7 = pnand %p646_p5, %p640_p12 }
  0x2b   : > { %650 = shalt.err (!%p647_p7)
}
  0x2c   : > { %s720_s29 = smov 128   ;;  %s721_s30 = smov 8  }
  0x2d   : > { %570 = dma.hbm_to_vmem [thread:$0]  (!%p819_p13), %s815_s5, 256, %s823_s7, %s825_s9, %s720_s29, %s720_s29, %s721_s30  }
  0x2e   : > { %p515_p9 = scmp.ge.s32.totalorder %s717_s17, 1  ;;  %p165_p1 = scmp.lt.s32.totalorder %s717_s17, 3 }
  0x30   : > { %p166_p3 = pnand %p515_p9, %p165_p1 }
  0x31   : > { %s856_s4 = sand.u32 (!%p166_p3), 1, %s709_s15  }
  0x32   : > { %169 = sbr.rel (%p166_p3) target bundleno = 345 (0x159), region = 32  ;;  %s516_s6 = sshll.u32 (!%p166_p3), %s856_s4, 4 }
  0x33   : > { %s172_s10 = scalar_lea.sflag (!%p166_p3), [#allocation4], %s856_s4  ;;  %s175_s11 = scalar_lea.vmem (!%p166_p3), [#allocation3], %s516_s6 }
  0x39   : > { %696 = dma.done.wait (%p795_p6), %s172_s10, 256  }
  0x3a   : > { %698 = vsyncadd (%p795_p6), %s172_s10, 4294967040  ;;  %p201_p11 = scmp.lt.s32.totalorder %s773_s0, 1  ;;  %v722_v0 = vmov 0.0|0.0   ;;  %vm723_vm0 = vmmov 0   ;;  %v724_v1 = vmov 0.0   ;;  %vm226_vm1 = vcmask 130048  }
  0x3b   : > { %559 = vmatprep.subr.bf16.mxu1 %v722_v0  ;;  %550 = vmatprep.mubr.msk.f32.mxu1 %vm723_vm0, %v724_v1  ;;  %vm873_vm2 = vmpackc.low %vm226_vm1, %vm226_vm1  ;;  %v216_v4 = vld [vmem:[%s175_s11] sm:$0xff]  ;;  %v217_v5 = vld [vmem:[%s175_s11 + $0x8] sm:$0xff]  ;;  %s204_s24 = sld [smem:[#allocation2]]  ;;  %v219_v15 = vlaneseq  ;;  %v725_v28 = vmov 1.0   ;;  %s531_s12 = sshll.u32 %s773_s0, 8 }
  0x3c   : > { %s202_s5 = scalar_select %p201_p11, %s773_s0, 1  ;;  %v553_v7 = vpack.c.bf16 %v217_v5, %v216_v4 }
  0x3d   : > { %v220_v16 = vshrl.u32 %v219_v15, 7  ;;  %s200_s13 = scalar_lea.vmem [#allocation6], %s516_s6  ;;  %s902_s23 = scalar_lea.hbm %s953_s3, %s531_s12 }
  0x3e   : > { %s203_s9 = scalar_lea.vmem %s951_s1, %s202_s5  ;;  %555 = vmatprep.subr.msk.bf16.mxu0 %vm873_vm2, %v553_v7  ;;  %s427_s18 = sshll.u32 %s200_s13, 4  ;;  %s904_s18 = int_to_ptr.vmem [resolvable:$true] %s427_s18 }
  0x3f   : > { %v205_v3 = vld [vmem:[%s203_s9] sm:$0x1]  ;;  %558 = vmatpush3.bf16.xpose.msk.msra.mxu0 %vm873_vm2, %v553_v7  ;;  %v221_v17 = vsub.s32 0, %v220_v16  ;;  %s414_s0 = scalar_lea.sflag [#allocation5], %s856_s4  ;;  %s651_s27 = scalar_lea.vmem %s904_s18, 256 }
  0x40   : > { %v206_v6 = vmax.f32 %v205_v3, 0.0  ;;  %p652_p6 = scmp.ne.s32.totalorder %s904_s18, %s651_s27  ;;  %p964_p12 = scmp.ne.s32.totalorder %s957_s25, 0 }
  0x41   : > { %v211_v11 = vstv %s204_s24  ;;  %s726_s28 = smov [#allocation6]  }
  0x42   : > { %vm877_vm3 = vcmp.gt.f32.partialorder %v206_v6, 0.0  ;;  %p653_p13 = pnand %p652_p6, %p964_p12  ;;  %s655_s29 = sshll.u32 %s726_s28, 4  ;;  %s656_s29 = int_to_ptr.vmem [resolvable:$false] %s655_s29 }
  0x43   : > { %v208_v9 = vsel %vm877_vm3, %v206_v6, 1.0  ;;  %s657_s30 = scalar_lea.vmem %s656_s29, 512  ;;  %p658_p10 = scmp.lt.s32.totalorder %s904_s18, %s656_s29 }
  0x44   : > { %617 = vlog2.f32 %v208_v9  ;;  %p654_p8 = pneg %p653_p13  ;;  %p659_p0 = scmp.lt.s32.totalorder %s657_s30, %s651_s27 }
  0x46   : > { %p660_p2 = por %p659_p0, %p658_p10 }
  0x48   : > { %p661_p4 = pnand %p660_p2, %p654_p8 }
  0x4e   : > { %v618_v10 = vpop.eup %617 }
  0x4f   : > { %v210_v12 = vmul.f32 0.6931472, %v618_v10 }
  0x51   : > { %v212_v13 = vmul.f32 %v211_v11, %v210_v12 }
  0x53   : > { %v213_v14 = vmul.f32 1.442695, %v212_v13 }
  0x55   : > { %619 = vpow2.f32 %v213_v14 }
  0x5f   : > { %v620_v18 = vpop.eup %619 }
  0x60   : > { %v215_v19 = vsel %vm877_vm3, %v620_v18, 0.0 }
  0x61   : > { %v222_v20 = vrot.slane %v215_v19, %v221_v17 }
  0x63   : > { %v224_v21 = vmul.f32 %v222_v20, %v216_v4  ;;  %v225_v22 = vmul.f32 %v222_v20, %v217_v5 }
  0x65   : > { %v314_v23 = vmul.f32 %v224_v21, %v216_v4  ;;  %v315_v24 = vmul.f32 %v225_v22, %v217_v5  ;;  %543 = vmatprep.mubr.msk.f32.mxu0 %vm226_vm1, %v224_v21 }
  0x66   : > { %544 = vmatmul.mubr.msk.f32.vlgmr.msra.gmra.mrb[0].mxu0 %vm226_vm1, %v225_v22 }
  0x67   : > { %v560_v25 = vpack.c.bf16 %v315_v24, %v314_v23  ;;  %v316_v26 = vsel %vm226_vm1, %v314_v23, 0.0  ;;  %v319_v27 = vsel %vm226_vm1, %v315_v24, 0.0 }
  0x68   : > { %317 = vadd.xlane.f32.xlu0 %v316_v26 }
  0x69   : > { %562 = vmatpush3.bf16.xpose.msk.msra.mxu1 %vm873_vm2, %v560_v25 }
  0x6c   : > { %320 = vadd.xlane.f32.xlu0 %v319_v27 }
  0x70   : > { %551 = vmatmul.mubr.msk.f32.vlgmr.msra.gmra.mrb[0].mxu1 %vm226_vm1, %v725_v28 }
  0xf5   : > { %v318_v31 = vpop.xlane.xlu0 %317 }
  0xf9   : > { %v321_v33 = vpop.xlane.xlu0 %320 }
 0x139   : > { %v545_v29 = vpop.f32.mrb[0].mxu0 }
 0x13a   : > { %v305_v30 = vpop.f32.mrb[1].mxu0  ;;  %v408_v34 = vmul.f32 2.0, %v545_v29 }
 0x13b   : > { %v407_v36 = vmul.f32 2.0, %v305_v30 }
 0x143   : > { %v397_v32 = vpop.f32.mrb[0].mxu1 }
 0x144   : > { %v404_v35 = vrot.slane %v397_v32, %v221_v17  ;;  %v552_v37 = vpop.f32.mrb[1].mxu1 }
 0x146   : > { %v405_v38 = vadd.f32 %v404_v35, %v318_v31  ;;  %v406_v39 = vadd.f32 %v404_v35, %v321_v33 }
 0x148   : > { %v409_v40 = vsub.f32 %v405_v38, %v407_v36  ;;  %v410_v41 = vsub.f32 %v406_v39, %v408_v34 }
 0x14a   : > { %411 = vst.msk [vmem:[%s200_s13] sm:$0xff] %vm226_vm1, %v409_v40  ;;  %412 = vst.msk [vmem:[%s200_s13 + $0x8] sm:$0xff] %vm226_vm1, %v410_v41 }
 0x14b   : > { %664 = shalt.err (!%p661_p4)
}
 0x14c   : > { %s665_s6 = scalar_lea.hbm %s902_s23, 256  ;;  %s669_s5 = scalar_lea.hbm %s953_s3, 512 }
 0x14d   : > { %p666_p5 = scmp.ne.s32.totalorder %s902_s23, %s665_s6  ;;  %p670_p1 = scmp.lt.u32.totalorder %s902_s23, %s953_s3 }
 0x14e   : > { %p671_p3 = scmp.lt.u32.totalorder %s669_s5, %s665_s6  ;;  %p673_p6 = scmp.lt.u32.totalorder %s665_s6, %s902_s23 }
 0x14f   : > { %p667_p7 = pnand %p666_p5, %p964_p12 }
 0x150   : > { %p672_p11 = por %p671_p3, %p670_p1 }
 0x151   : > { %p668_p9 = pneg %p667_p7 }
 0x152   : > { %p674_p13 = por %p673_p6, %p672_p11 }
 0x154   : > { %p675_p8 = pnand %p674_p13, %p668_p9 }
 0x156   : > { %678 = shalt.err (!%p675_p8)
}
 0x157   : > { %s727_s9 = smov 128   ;;  %s728_s24 = smov 8  }
 0x158   : > { %565 = dma.vmem_to_hbm [thread:$0]  (%p964_p12), %s904_s18, 256, %s902_s23, %s414_s0, %s727_s9, %s727_s9, %s728_s24  }
 0x159 PF: > { %s442_s12 = sand.u32 1, %s705_s14   ;;  %p965_p10 = scmp.ne.s32.totalorder %s958_s26, 0 }
 0x15a   : > { %p966_p0 = scmp.ge.s32.totalorder %s717_s17, 2  ;;  %s443_s13 = scalar_lea.sflag [#allocation5], %s442_s12 }
 0x15c   : > { %p572_p2 = pnand %p966_p0, %p965_p10 }
 0x15e   : > { %700 = dma.done.wait (!%p572_p2), %s443_s13, 256  }
 0x15f   : > { %702 = vsyncadd (!%p572_p2), %s443_s13, 4294967040  ;;  %p17_p4 = scmp.ge.s32.totalorder %s777_s19, 4   ;;  %s967_s14 = smov %s709_s15 }
 0x160   : > { %s968_s15 = smov %s713_s16  ;;  %s969_s16 = smov %s789_s22 }
 0x161   : > { %s970_s17 = smov %s777_s19  ;;  %19 = sbr.rel (!%p17_p4) target bundleno = 7 (0x7), region = 80 }
 0x168   :  { %448 = vsyncpa [#allocation4], 1 }
 0x169   :  { %450 = vsyncpa [#allocation4 + $0x1], 1 }
 0x16a   :  { %451 = vsyncpa [#allocation5], 1 }
 0x16b   :  { %453 = vsyncpa [#allocation5 + $0x1], 1 }

</bundles_post_ra>
